<compile_context>
chip_gen: v7x
topology: tpu7x:2x2x1
jax: 0.10.0
libtpu: 0.0.40
codegen_flags: <defaults>
</compile_context>

<pallas_src>
import functools

import jax
import jax.numpy as jnp
from jax.experimental import pallas as pl
from jax.experimental.pallas import tpu as pltpu

NEG_SLOPE = 0.01                     # F.leaky_relu default
D_IN, D_H1, D_H2, D_OUT = 104, 250, 100, 4
H1_PAD, H2_PAD, W3_PAD = 256, 128, 128   # MXU/lane friendly padded widths


def _round_up(n, m):
    return ((n + m - 1) // m) * m


def _cdiv(a, b):
    return (a + b - 1) // b


def _leaky_relu(x):
    return jnp.where(x > 0, x, NEG_SLOPE * x)


def mlp_kernel(x_ref, w1_ref, b1_ref, w2_ref, b2_ref, w3_ref, b3_ref, o_ref):
    # x_ref: [TB, 104] f32 ; weights bf16 (zero-padded) ; biases f32 (padded).
    # Cast x per tile (avoids a separate wrapper pass over x in HBM).
    x = x_ref[...].astype(jnp.bfloat16)

    # layer 1: Linear(104, 250) + leaky_relu  (bf16 MXU, f32 accumulate)
    h1 = jnp.dot(x, w1_ref[...], preferred_element_type=jnp.float32)
    h1 = _leaky_relu(h1 + b1_ref[...])                    # f32 VPU work

    # layer 2: Linear(250, 100) + leaky_relu
    h2 = jnp.dot(h1.astype(jnp.bfloat16), w2_ref[...],
                 preferred_element_type=jnp.float32)
    h2 = _leaky_relu(h2 + b2_ref[...])

    # layer 3: Linear(100, 4) -- MXU runs on the 128-wide padded weights; only
    # the 4 real columns are stored (narrow HBM writeback).
    out = jnp.dot(h2.astype(jnp.bfloat16), w3_ref[...],
                  preferred_element_type=jnp.float32) + b3_ref[...]
    o_ref[...] = out[:, :D_OUT].astype(o_ref.dtype)


@functools.partial(jax.jit, static_argnames=("tb",))
def model_player_forward(x, params, *, tb=4096):
    """x: [B, 104] float32 -> [B, 4] float32."""
    w1, b1, w2, b2, w3, b3 = params
    B = x.shape[0]

    # Zero-pad hidden/output dims once (weights are tiny). Padded columns/rows
    # contribute exactly zero, so the math is unchanged. D_IN is NOT padded.
    w1p = jnp.zeros((D_IN, H1_PAD), jnp.bfloat16).at[:, :D_H1].set(
        w1.astype(jnp.bfloat16))
    b1p = jnp.zeros((1, H1_PAD), jnp.float32).at[:, :D_H1].set(b1)
    w2p = jnp.zeros((H1_PAD, H2_PAD), jnp.bfloat16).at[:D_H1, :D_H2].set(
        w2.astype(jnp.bfloat16))
    b2p = jnp.zeros((1, H2_PAD), jnp.float32).at[:, :D_H2].set(b2)
    w3p = jnp.zeros((H2_PAD, W3_PAD), jnp.bfloat16).at[:D_H2, :D_OUT].set(
        w3.astype(jnp.bfloat16))
    b3p = jnp.zeros((1, W3_PAD), jnp.float32).at[:, :D_OUT].set(b3)

    # Batch tile: large to amortize ~0.35us/step overhead, but capped near B/2
    # so the grid has >=2 steps (v7x megacore shards the batch over both TCs).
    TB = min(tb, max(8, _round_up(_cdiv(B, 2), 8)))
    grid = (_cdiv(B, TB),)
    # Tail tile (B % TB != 0): OOB input rows may hold garbage, but each row is
    # independent through the matmuls and Pallas masks the OOB output writes,
    # so no padded data ever reaches HBM.

    # Weights/biases: constant index_map -> resident in VMEM across grid steps.
    const2d = lambda shape: pl.BlockSpec(shape, lambda i: (0, 0))

    flops = 2 * B * (D_IN * H1_PAD + H1_PAD * H2_PAD + H2_PAD * W3_PAD)
    bytes_accessed = (
        B * D_IN * 4                                            # x (f32)
        + (D_IN * H1_PAD + H1_PAD * H2_PAD + H2_PAD * W3_PAD) * 2  # weights bf16
        + (H1_PAD + H2_PAD + W3_PAD) * 4                        # biases f32
        + B * D_OUT * 4                                         # output f32
    )

    out = pl.pallas_call(
        mlp_kernel,
        out_shape=jax.ShapeDtypeStruct((B, D_OUT), jnp.float32),
        grid_spec=pltpu.PrefetchScalarGridSpec(
            num_scalar_prefetch=0,
            grid=grid,
            in_specs=[
                pl.BlockSpec((TB, D_IN), lambda i: (i, 0)),   # x: tiled on batch
                const2d(w1p.shape), const2d(b1p.shape),
                const2d(w2p.shape), const2d(b2p.shape),
                const2d(w3p.shape), const2d(b3p.shape),
            ],
            out_specs=pl.BlockSpec((TB, D_OUT), lambda i: (i, 0)),
        ),
        compiler_params=pltpu.CompilerParams(
            dimension_semantics=("parallel",),        # megacore batch sharding
            vmem_limit_bytes=48 * 1024 * 1024,        # TB=4096 working set ~16 MB
        ),
        cost_estimate=pl.CostEstimate(
            flops=flops, transcendentals=0, bytes_accessed=bytes_accessed),
    )(x, w1p, b1p, w2p, b2p, w3p, b3p)

    return out


def init_params(key):
    """Deterministic init matching nn.Linear (uniform +/- 1/sqrt(fan_in))."""
    def linear(key, fan_in, fan_out):
        kw, kb = jax.random.split(key)
        bound = 1.0 / jnp.sqrt(fan_in)
        # stored [in, out] so the kernel computes x @ W + b (== x @ W_pt.T + b)
        w = jax.random.uniform(kw, (fan_in, fan_out), jnp.float32, -bound, bound)
        b = jax.random.uniform(kb, (1, fan_out), jnp.float32, -bound, bound)
        return w, b

    k1, k2, k3 = jax.random.split(key, 3)
    w1, b1 = linear(k1, D_IN, D_H1)
    w2, b2 = linear(k2, D_H1, D_H2)
    w3, b3 = linear(k3, D_H2, D_OUT)
    return (w1, b1, w2, b2, w3, b3)


def reference_forward_f32(x, params):
    """Pure-JAX f32 reference of the PyTorch forward."""
    w1, b1, w2, b2, w3, b3 = params
    h = jax.nn.leaky_relu(x @ w1 + b1, NEG_SLOPE)
    h = jax.nn.leaky_relu(h @ w2 + b2, NEG_SLOPE)
    return h @ w3 + b3


def reference_forward_bf16(x, params):
    """Pure-JAX reference with the same bf16-MXU / f32-accumulate math."""
    w1, b1, w2, b2, w3, b3 = params
    dot = lambda a, b: jnp.dot(a.astype(jnp.bfloat16), b.astype(jnp.bfloat16),
                               preferred_element_type=jnp.float32)
    h = jax.nn.leaky_relu(dot(x, w1) + b1, NEG_SLOPE)
    h = jax.nn.leaky_relu(dot(h, w2) + b2, NEG_SLOPE)
    return dot(h, w3) + b3


if __name__ == "__main__":
    key = jax.random.PRNGKey(0)
    kp, kx = jax.random.split(key)

    params = init_params(kp)
    B = 8  # small example batch; feature dim 104 per encode_hand concat
    x = jax.random.normal(kx, (B, D_IN), jnp.float32)

    out = model_player_forward(x, params)
    out = jax.block_until_ready(out)
    assert out.shape == (B, D_OUT), out.shape

    # Tight check vs. a reference using identical bf16/f32 math.
    ref_bf16 = reference_forward_bf16(x, params)
    assert jnp.allclose(out, ref_bf16, atol=1e-2, rtol=1e-2), "mismatch vs bf16 ref"

    # Loose sanity check vs. the full-f32 PyTorch-equivalent reference.
    # (Inter-layer activations are rounded to bf16 before each matmul -- an
    # intentional MXU-throughput tradeoff; accumulation/bias/activation are f32.)
    ref_f32 = reference_forward_f32(x, params)
    assert jnp.allclose(out, ref_f32, atol=1e-1, rtol=1e-1), "mismatch vs f32 ref"

    print("KERNEL_OK")
</pallas_src>

<mosaic_0001>
module attributes {stable_mosaic.version = 11 : i64} {
  func.func @mlp_kernel(%arg0: i32, %arg1: memref<8x104xf32, #tpu.memory_space<vmem>>, %arg2: memref<104x256xbf16, #tpu.memory_space<vmem>>, %arg3: memref<1x256xf32, #tpu.memory_space<vmem>>, %arg4: memref<256x128xbf16, #tpu.memory_space<vmem>>, %arg5: memref<1x128xf32, #tpu.memory_space<vmem>>, %arg6: memref<128x128xbf16, #tpu.memory_space<vmem>>, %arg7: memref<1x128xf32, #tpu.memory_space<vmem>>, %arg8: memref<8x4xf32, #tpu.memory_space<vmem>>) attributes {dimension_semantics = [#tpu.dimension_semantics<parallel>], iteration_bounds = array<i64: 1>, scalar_prefetch = 0 : i64, scratch_operands = 0 : i64, tpu.core_type = #tpu.core_type<tc>, window_params = [{transform_indices = @transform_0, window_bounds = array<i64: 8, 104>}, {pipeline_mode = #tpu.pipeline_mode<synchronous>, transform_indices = @transform_1, window_bounds = array<i64: 104, 256>}, {pipeline_mode = #tpu.pipeline_mode<synchronous>, transform_indices = @transform_2, window_bounds = array<i64: 1, 256>}, {pipeline_mode = #tpu.pipeline_mode<synchronous>, transform_indices = @transform_3, window_bounds = array<i64: 256, 128>}, {pipeline_mode = #tpu.pipeline_mode<synchronous>, transform_indices = @transform_4, window_bounds = array<i64: 1, 128>}, {pipeline_mode = #tpu.pipeline_mode<synchronous>, transform_indices = @transform_5, window_bounds = array<i64: 128, 128>}, {pipeline_mode = #tpu.pipeline_mode<synchronous>, transform_indices = @transform_6, window_bounds = array<i64: 1, 128>}, {transform_indices = @transform_7, window_bounds = array<i64: 8, 4>}]} {
    %c0 = arith.constant 0 : index
    %c0_0 = arith.constant 0 : index
    %0 = vector.load %arg1[%c0, %c0_0] : memref<8x104xf32, #tpu.memory_space<vmem>>, vector<8x104xf32>
    %1 = arith.truncf %0 : vector<8x104xf32> to vector<8x104xbf16>
    %c0_1 = arith.constant 0 : index
    %c0_2 = arith.constant 0 : index
    %2 = vector.load %arg2[%c0_1, %c0_2] : memref<104x256xbf16, #tpu.memory_space<vmem>>, vector<104x256xbf16>
    %cst = arith.constant dense<0.000000e+00> : vector<8x256xf32>
    %3 = tpu.matmul %1, %2, %cst {dimension_numbers = #tpu.dot_dimension_numbers<[1], [0], [0], [1], [0, 0, 1, 1], [], []>} : vector<8x104xbf16>, vector<104x256xbf16>, vector<8x256xf32> -> vector<8x256xf32>
    %c0_3 = arith.constant 0 : index
    %c0_4 = arith.constant 0 : index
    %4 = vector.load %arg3[%c0_3, %c0_4] : memref<1x256xf32, #tpu.memory_space<vmem>>, vector<1x256xf32>
    %5 = vector.broadcast %4 : vector<1x256xf32> to vector<8x256xf32>
    %6 = arith.addf %3, %5 : vector<8x256xf32>
    %cst_5 = arith.constant 0.000000e+00 : f32
    %7 = vector.broadcast %cst_5 : f32 to vector<8x256xf32>
    %8 = arith.cmpf ogt, %6, %7 : vector<8x256xf32>
    %cst_6 = arith.constant 0.00999999977 : f32
    %9 = vector.broadcast %cst_6 : f32 to vector<8x256xf32>
    %10 = arith.mulf %9, %6 : vector<8x256xf32>
    %11 = arith.select %8, %6, %10 : vector<8x256xi1>, vector<8x256xf32>
    %12 = arith.truncf %11 : vector<8x256xf32> to vector<8x256xbf16>
    %c0_7 = arith.constant 0 : index
    %c0_8 = arith.constant 0 : index
    %13 = vector.load %arg4[%c0_7, %c0_8] : memref<256x128xbf16, #tpu.memory_space<vmem>>, vector<256x128xbf16>
    %cst_9 = arith.constant dense<0.000000e+00> : vector<8x128xf32>
    %14 = tpu.matmul %12, %13, %cst_9 {dimension_numbers = #tpu.dot_dimension_numbers<[1], [0], [0], [1], [0, 0, 1, 1], [], []>} : vector<8x256xbf16>, vector<256x128xbf16>, vector<8x128xf32> -> vector<8x128xf32>
    %c0_10 = arith.constant 0 : index
    %c0_11 = arith.constant 0 : index
    %15 = vector.load %arg5[%c0_10, %c0_11] : memref<1x128xf32, #tpu.memory_space<vmem>>, vector<1x128xf32>
    %16 = vector.broadcast %15 : vector<1x128xf32> to vector<8x128xf32>
    %17 = arith.addf %14, %16 : vector<8x128xf32>
    %cst_12 = arith.constant 0.000000e+00 : f32
    %18 = vector.broadcast %cst_12 : f32 to vector<8x128xf32>
    %19 = arith.cmpf ogt, %17, %18 : vector<8x128xf32>
    %cst_13 = arith.constant 0.00999999977 : f32
    %20 = vector.broadcast %cst_13 : f32 to vector<8x128xf32>
    %21 = arith.mulf %20, %17 : vector<8x128xf32>
    %22 = arith.select %19, %17, %21 : vector<8x128xi1>, vector<8x128xf32>
    %23 = arith.truncf %22 : vector<8x128xf32> to vector<8x128xbf16>
    %c0_14 = arith.constant 0 : index
    %c0_15 = arith.constant 0 : index
    %24 = vector.load %arg6[%c0_14, %c0_15] : memref<128x128xbf16, #tpu.memory_space<vmem>>, vector<128x128xbf16>
    %cst_16 = arith.constant dense<0.000000e+00> : vector<8x128xf32>
    %25 = tpu.matmul %23, %24, %cst_16 {dimension_numbers = #tpu.dot_dimension_numbers<[1], [0], [0], [1], [0, 0, 1, 1], [], []>} : vector<8x128xbf16>, vector<128x128xbf16>, vector<8x128xf32> -> vector<8x128xf32>
    %c0_17 = arith.constant 0 : index
    %c0_18 = arith.constant 0 : index
    %26 = vector.load %arg7[%c0_17, %c0_18] : memref<1x128xf32, #tpu.memory_space<vmem>>, vector<1x128xf32>
    %27 = vector.broadcast %26 : vector<1x128xf32> to vector<8x128xf32>
    %28 = arith.addf %25, %27 : vector<8x128xf32>
    %29 = vector.extract_strided_slice %28 {offsets = [0, 0], sizes = [8, 4], strides = [1, 1]} : vector<8x128xf32> to vector<8x4xf32>
    %c0_19 = arith.constant 0 : index
    %c0_20 = arith.constant 0 : index
    %30 = vector.load %arg8[%c0_19, %c0_20] : memref<8x4xf32, #tpu.memory_space<vmem>>, vector<8x4xf32>
    tpu.vector_store %arg8[%c0_19, %c0_20], %29 {strides = array<i32>} : memref<8x4xf32, #tpu.memory_space<vmem>>, vector<8x4xf32>,
    return
  }
  func.func @transform_0(%arg0: i32) -> (i32, i32) {
    %c0_i32 = arith.constant 0 : i32
    %c0_i32_0 = arith.constant 0 : i32
    return %arg0, %c0_i32 : i32, i32
  }
  func.func @transform_1(%arg0: i32) -> (i32, i32) {
    %c0_i32 = arith.constant 0 : i32
    %c0_i32_0 = arith.constant 0 : i32
    %c0_i32_1 = arith.constant 0 : i32
    return %c0_i32, %c0_i32_0 : i32, i32
  }
  func.func @transform_2(%arg0: i32) -> (i32, i32) {
    %c0_i32 = arith.constant 0 : i32
    %c0_i32_0 = arith.constant 0 : i32
    %c0_i32_1 = arith.constant 0 : i32
    return %c0_i32, %c0_i32_0 : i32, i32
  }
  func.func @transform_3(%arg0: i32) -> (i32, i32) {
    %c0_i32 = arith.constant 0 : i32
    %c0_i32_0 = arith.constant 0 : i32
    %c0_i32_1 = arith.constant 0 : i32
    return %c0_i32, %c0_i32_0 : i32, i32
  }
  func.func @transform_4(%arg0: i32) -> (i32, i32) {
    %c0_i32 = arith.constant 0 : i32
    %c0_i32_0 = arith.constant 0 : i32
    %c0_i32_1 = arith.constant 0 : i32
    return %c0_i32, %c0_i32_0 : i32, i32
  }
  func.func @transform_5(%arg0: i32) -> (i32, i32) {
    %c0_i32 = arith.constant 0 : i32
    %c0_i32_0 = arith.constant 0 : i32
    %c0_i32_1 = arith.constant 0 : i32
    return %c0_i32, %c0_i32_0 : i32, i32
  }
  func.func @transform_6(%arg0: i32) -> (i32, i32) {
    %c0_i32 = arith.constant 0 : i32
    %c0_i32_0 = arith.constant 0 : i32
    %c0_i32_1 = arith.constant 0 : i32
    return %c0_i32, %c0_i32_0 : i32, i32
  }
  func.func @transform_7(%arg0: i32) -> (i32, i32) {
    %c0_i32 = arith.constant 0 : i32
    %c0_i32_0 = arith.constant 0 : i32
    return %arg0, %c0_i32 : i32, i32
  }
}

</mosaic_0001>

<bundles_post_ra>
// kernel: model_player_forward.1
= control target key start
LH: loop header
LB: loop body
LE: loop exit
PB: predicated region body
PF: predicated region fallthrough
CT: control target
= control target key end

     0   :  { %v615_v1 = vmov 0   ;;  %vm123_vm0 = vcmask 1043456   ;;  %vm119_vm1 = vcmask 850944   ;;  %v616_v35 = vmov 0.0   ;;  %s784_s1 = inlined_call_operand.vmem [shape: bf16[104,256], index: 1, kind: input, shape index: {}]   ;;  %s785_s3 = inlined_call_operand.vmem [shape: bf16[256,128], index: 3, kind: input, shape index: {}]   ;;  %s786_s0 = inlined_call_operand.vmem [shape: f32[8,104], index: 0, kind: input, shape index: {}]   ;;  %s787_s5 = inlined_call_operand.vmem [shape: bf16[128,128], index: 5, kind: input, shape index: {}]   ;;  %s788_s2 = inlined_call_operand.vmem [shape: f32[1,256], index: 2, kind: input, shape index: {}]   ;;  %s789_s4 = inlined_call_operand.vmem [shape: f32[1,128], index: 4, kind: input, shape index: {}]   ;;  %s790_s6 = inlined_call_operand.vmem [shape: f32[1,128], index: 6, kind: input, shape index: {}]   ;;  %s791_s7 = inlined_call_operand.vmem [shape: f32[8,4], index: 7, kind: output, shape index: {}]  }
   0x1   :  { %v571_v0 = vld [vmem:[%s784_s1 + $0x4] ss:$8 sps:$4 sm:$0xff]   ;;  %162 = vmatprep.mubr.bf16.mxu0 %v615_v1  ;;  %v573_v2 = vld [vmem:[%s784_s1] ss:$8 sps:$4 sm:$0xff]   ;;  %v574_v3 = vld [vmem:[%s784_s1 + $0x14] ss:$8 sps:$4 sm:$0xff]   ;;  %v44_v41 = vlaneseq }
   0x2   :  { %130 = vmatprep.subr.bf16.mxu0 %v571_v0  ;;  %v576_v4 = vld [vmem:[%s784_s1 + $0x10] ss:$8 sps:$4 sm:$0xff]   ;;  %v577_v5 = vld [vmem:[%s784_s1 + $0x24] ss:$8 sps:$4 sm:$0xff]   ;;  %v579_v6 = vld [vmem:[%s784_s1 + $0x20] ss:$8 sps:$4 sm:$0xff]  }
   0x3   :  { %131 = vmatpush1.bf16.msra.mxu0 %v573_v2  ;;  %v580_v7 = vld [vmem:[%s784_s1 + $0x34] ss:$8 sps:$4 sm:$0xff]   ;;  %v582_v8 = vld [vmem:[%s784_s1 + $0x30] ss:$8 sps:$4 sm:$0xff]   ;;  %v591_v9 = vld [vmem:[%s785_s3 + $0x40] sm:$0xff]   ;;  %v45_v42 = vshrl.u32 %v44_v41, 7 }
   0x4   :  { %132 = vmatprep.subr.bf16.mxu0 %v574_v3  ;;  %v583_v10 = vld [vmem:[%s784_s1 + $0x44] ss:$8 sps:$4 sm:$0xff]   ;;  %517 = vmatprep.subr.bf16.mxu1 %v591_v9  ;;  %v585_v14 = vld [vmem:[%s784_s1 + $0x40] ss:$8 sps:$4 sm:$0xff]   ;;  %v595_v15 = vld [vmem:[%s785_s3 + $0x50] sm:$0xff]   ;;  %vm617_vm4 = vmmov 0  }
   0x5   :  { %v592_v11 = vld [vmem:[%s785_s3] sm:$0xff]   ;;  %v593_v12 = vld [vmem:[%s785_s3 + $0x48] sm:$0xff]   ;;  %v586_v16 = vld [vmem:[%s784_s1 + $0x54] ss:$8 sps:$4 sm:$0xff]   ;;  %v46_v43 = vsub.s32 0, %v45_v42  ;;  %v50_v45 = vsub.s32 1, %v45_v42 }
   0x6   :  { %518 = vmatpush3.bf16.msra.mxu1 %v592_v11  ;;  %v594_v13 = vld [vmem:[%s785_s3 + $0x8] sm:$0xff]   ;;  %v41_v17 = vld [vmem:[%s784_s1 + $0x60] sm:$0xff]  ;;  %v596_v18 = vld [vmem:[%s785_s3 + $0x10] sm:$0xff]   ;;  %vm469_vm6 = vcmask 31744  }
   0x7   :  { %133 = vmatpush1.bf16.msra.mxu0 %v576_v4  ;;  %519 = vmatprep.subr.bf16.mxu1 %v593_v12  ;;  %v597_v19 = vld [vmem:[%s785_s3 + $0x58] sm:$0xff]   ;;  %v488_v21 = vcombine.high %v41_v17, %v41_v17  ;;  %v487_v22 = vcombine.low %v41_v17, %v41_v17  ;;  %v599_v24 = vld [vmem:[%s785_s3 + $0x60] sm:$0xff]   ;;  %v601_v28 = vld [vmem:[%s785_s3 + $0x68] sm:$0xff]  }
   0x8   :  { %134 = vmatprep.subr.bf16.mxu0 %v577_v5  ;;  %v588_v20 = vld [vmem:[%s784_s1 + $0x50] ss:$8 sps:$4 sm:$0xff]   ;;  %v27_v25 = vld [vmem:[%s786_s0] sm:$0xff]  ;;  %v602_v30 = vld [vmem:[%s785_s3 + $0x28] sm:$0xff]  }
   0x9   :  { %v598_v23 = vld [vmem:[%s785_s3 + $0x18] sm:$0xff]   ;;  %v125_v26 = vsel %vm123_vm0, %v487_v22, 0  ;;  %v600_v27 = vld [vmem:[%s785_s3 + $0x20] sm:$0xff]   ;;  %v28_v29 = vpack.c.bf16 %v27_v25, %v27_v25  ;;  %v603_v31 = vld [vmem:[%s785_s3 + $0x70] sm:$0xff]  }
   0xa   :  { %520 = vmatpush3.bf16.msra.mxu1 %v594_v13  ;;  %v604_v32 = vld [vmem:[%s785_s3 + $0x30] sm:$0xff]   ;;  %v605_v33 = vld [vmem:[%s785_s3 + $0x78] sm:$0xff]   ;;  %v607_v36 = vld [vmem:[%s787_s5] sm:$0xff]  }
   0xb   :  { %135 = vmatpush1.bf16.msra.mxu0 %v579_v6  ;;  %521 = vmatprep.subr.bf16.mxu1 %v595_v15  ;;  %v606_v34 = vld [vmem:[%s785_s3 + $0x38] sm:$0xff]   ;;  %v608_v37 = vld [vmem:[%s787_s5 + $0x8] sm:$0xff]   ;;  %v609_v38 = vld [vmem:[%s787_s5 + $0x10] sm:$0xff]  }
   0xc   :  { %136 = vmatprep.subr.bf16.mxu0 %v580_v7  ;;  %v610_v39 = vld [vmem:[%s787_s5 + $0x18] sm:$0xff]   ;;  %v611_v40 = vld [vmem:[%s787_s5 + $0x20] sm:$0xff]   ;;  %v612_v60 = vld [vmem:[%s787_s5 + $0x28] sm:$0xff]  }
   0xd   :  { %v42_v44 = vld [vmem:[%s788_s2] sm:$0x3]  ;;  %v613_v61 = vld [vmem:[%s787_s5 + $0x30] sm:$0xff]   ;;  %v614_v62 = vld [vmem:[%s787_s5 + $0x38] sm:$0xff]  }
   0xe   :  { %522 = vmatpush3.bf16.msra.mxu1 %v596_v18  ;;  %v47_v46 = vrot.slane %v42_v44, %v46_v43  ;;  %v51_v47 = vrot.slane %v42_v44, %v50_v45  ;;  %v491_v0 = vld [vmem:[%s789_s4] ss:$0 sm:$0xff] }
   0xf   :  { %137 = vmatpush1.bf16.msra.mxu0 %v582_v8  ;;  %523 = vmatprep.subr.bf16.mxu1 %v597_v19  ;;  %v508_v9 = vld [vmem:[%s790_s6] ss:$0 sm:$0xff] }
  0x10   :  { %138 = vmatprep.subr.bf16.mxu0 %v583_v10 }
  0x12   :  { %524 = vmatpush3.bf16.msra.mxu1 %v598_v23 }
  0x13   :  { %139 = vmatpush1.bf16.msra.mxu0 %v585_v14  ;;  %525 = vmatprep.subr.bf16.mxu1 %v599_v24 }
  0x14   :  { %140 = vmatprep.subr.bf16.mxu0 %v586_v16 }
  0x16   :  { %526 = vmatpush3.bf16.msra.mxu1 %v600_v27 }
  0x17   :  { %141 = vmatpush1.bf16.msra.mxu0 %v588_v20  ;;  %527 = vmatprep.subr.bf16.mxu1 %v601_v28 }
  0x18   :  { %489 = vmatprep.subr.msk.bf16.mxu0 %vm123_vm0, %v488_v21 }
  0x1a   :  { %528 = vmatpush3.bf16.msra.mxu1 %v602_v30 }
  0x1b   :  { %143 = vmatpush1.bf16.msra.mxu0 %v125_v26  ;;  %529 = vmatprep.subr.bf16.mxu1 %v603_v31 }
  0x1c   :  { %548 = vmatprep.subr.bf16.mxu0 %v616_v35 }
  0x1e   :  { %490 = vmatmul.mubr.msk.bf16.vlgmr.msra.gmra.mrb[0].mxu0 %vm119_vm1, %v28_v29  ;;  %530 = vmatpush3.bf16.msra.mxu1 %v604_v32 }
  0x1f   :  { %531 = vmatprep.subr.bf16.mxu1 %v605_v33  ;;  %549 = vmatpush3.bf16.msra.mxu0 %v607_v36 }
  0x20   :  { %550 = vmatprep.subr.bf16.mxu0 %v616_v35  ;;  %564 = vmatprep.mubr.msk.bf16.mxu0 %vm617_vm4, %v616_v35 }
  0x22   :  { %532 = vmatpush3.bf16.msra.mxu1 %v606_v34 }
  0x23   :  { %551 = vmatpush3.bf16.msra.mxu0 %v608_v37 }
  0x24   :  { %552 = vmatprep.subr.bf16.mxu0 %v616_v35 }
  0x27   :  { %553 = vmatpush3.bf16.msra.mxu0 %v609_v38 }
  0x28   :  { %554 = vmatprep.subr.bf16.mxu0 %v616_v35 }
  0x2b   :  { %555 = vmatpush3.bf16.msra.mxu0 %v610_v39 }
  0x2c   :  { %556 = vmatprep.subr.bf16.mxu0 %v616_v35 }
  0x2f   :  { %557 = vmatpush3.bf16.msra.mxu0 %v611_v40 }
  0x30   :  { %558 = vmatprep.subr.bf16.mxu0 %v616_v35 }
  0x33   :  { %559 = vmatpush3.bf16.msra.mxu0 %v612_v60 }
  0x34   :  { %560 = vmatprep.subr.bf16.mxu0 %v616_v35 }
  0x37   :  { %561 = vmatpush3.bf16.msra.mxu0 %v613_v61 }
  0x38   :  { %562 = vmatprep.subr.bf16.mxu0 %v616_v35 }
  0x3b   :  { %563 = vmatpush3.bf16.msra.mxu0 %v614_v62 }
  0xf1   :  { %v164_v48 = vpop.f32.mrb[0].mxu0 }
  0xf2   :  { %v165_v49 = vadd.f32 %v164_v48, %v47_v46  ;;  %v166_v50 = vpop.f32.mrb[1].mxu0 }
  0xf3   :  { %v167_v51 = vadd.f32 %v166_v50, %v51_v47  ;;  %v168_v52 = vpop.f32.mrb[2].mxu0 }
  0xf4   :  { %vm171_vm2 = vcmp.gt.f32.partialorder %v165_v49, 0.0  ;;  %v173_v53 = vmul.f32 0.01, %v165_v49  ;;  %v169_v54 = vpop.f32.mrb[3].mxu0 }
  0xf5   :  { %vm172_vm3 = vcmp.gt.f32.partialorder %v167_v51, 0.0  ;;  %v174_v55 = vmul.f32 0.01, %v167_v51 }
  0xf6   :  { %v175_v56 = vsel %vm171_vm2, %v165_v49, %v173_v53 }
  0xf7   :  { %v176_v57 = vsel %vm172_vm3, %v167_v51, %v174_v55  ;;  %v177_v59 = vpack.c.bf16 %v175_v56, %v175_v56 }
  0xf8   :  { %v178_v58 = vpack.c.bf16 %v176_v57, %v176_v57 }
  0xfa   :  { %346 = vmatprep.mubr.bf16.mxu1 %v178_v58 }
  0xfb   :  { %347 = vmatmul.mubr.bf16.vlgmr.msra.gmra.mrb[0].mxu1 %v177_v59 }
 0x1ce   :  { %v533_v63 = vpop.f32.mrb[0].mxu1 }
 0x1cf   :  { %v534_v1 = vpop.f32.mrb[1].mxu1 }
 0x1d0   :  { %v535_v2 = vadd.f32 %v534_v1, %v533_v63  ;;  %v536_v3 = vpop.f32.mrb[2].mxu1 }
 0x1d1   :  { %v537_v4 = vpop.f32.mrb[3].mxu1 }
 0x1d2   :  { %v349_v5 = vadd.f32 %v535_v2, %v491_v0 }
 0x1d4   :  { %vm354_vm5 = vcmp.gt.f32.partialorder %v349_v5, 0.0  ;;  %v355_v6 = vmul.f32 0.01, %v349_v5 }
 0x1d6   :  { %v356_v7 = vsel %vm354_vm5, %v349_v5, %v355_v6 }
 0x1d7   :  { %v357_v8 = vpack.c.bf16 %v356_v7, %v356_v7 }
 0x1d9   :  { %565 = vmatmul.mubr.bf16.vlgmr.msra.gmra.mrb[4].mxu0 %v357_v8 }
 0x2ac   :  { %v463_v10 = vpop.f32.mrb[4].mxu0 }
 0x2ad   :  { %v464_v11 = vadd.f32 %v508_v9, %v463_v10  ;;  %v566_v12 = vpop.f32.mrb[5].mxu0 }
 0x2ae   :  { %v466_v13 = vpop.f32.mrb[6].mxu0 }
 0x2af   :  { %470 = vst.msk [vmem:[%s791_s7] sm:$0xff] %vm469_vm6, %v464_v11  ;;  %v567_v14 = vpop.f32.mrb[7].mxu0 }

</bundles_post_ra>
